<compile_context>
chip_gen: v6e
topology: v6e:2x2x1
jax: 0.10.0
libtpu: 0.0.40
codegen_flags: <defaults>
</compile_context>

<pallas_src>
import math
from functools import partial

import jax
import jax.numpy as jnp
from jax import lax
from jax.experimental import pallas as pl
from jax.experimental.pallas import tpu as pltpu


def _fit(dim, pref, *, align=8):
    """Largest tile t <= pref that divides dim and is a multiple of `align`;
    the full dim (always a legal full-extent block) if dim <= pref or no
    aligned divisor exists."""
    if dim <= pref:
        return dim
    for t in range(pref, align - 1, -1):
        if dim % t == 0 and t % align == 0:
            return t
    return dim


# ----------------------------------------------------------------------------
# Kernel 1: tiled linear  y = x @ w_t + b   (w_t already (Din, Dout))
# ----------------------------------------------------------------------------
def _linear_kernel_noacc(x_ref, w_ref, b_ref, o_ref, *, compute_dtype):
    # Single K step: full reduction dim resident, direct store (no scratch).
    acc = jnp.dot(x_ref[...].astype(compute_dtype),
                  w_ref[...].astype(compute_dtype),
                  preferred_element_type=jnp.float32)
    o_ref[...] = (acc + b_ref[...]).astype(o_ref.dtype)


def _linear_kernel_acc(x_ref, w_ref, b_ref, o_ref, acc_ref, *, compute_dtype):
    @pl.when(pl.program_id(2) == 0)
    def _():
        acc_ref[...] = jnp.zeros(acc_ref.shape, jnp.float32)

    acc_ref[...] += jnp.dot(x_ref[...].astype(compute_dtype),
                            w_ref[...].astype(compute_dtype),
                            preferred_element_type=jnp.float32)

    @pl.when(pl.program_id(2) == pl.num_programs(2) - 1)
    def _():
        o_ref[...] = (acc_ref[...] + b_ref[...]).astype(o_ref.dtype)


def linear(x, w_t, b, *, compute_dtype,
           tm_pref=256, tn_pref=512, din_resident_max=2048):
    """x: (M, Din); w_t: (Din, Dout) (pre-transposed); b: (Dout,) -> (M, Dout)."""
    M, Din = x.shape
    Dout = w_t.shape[1]
    tm = _fit(M, tm_pref, align=8)
    tn = _fit(Dout, tn_pref, align=128)
    b2 = b.reshape(1, Dout)

    if Din <= din_resident_max:
        # Keep the whole reduction dim resident: no K axis, no accumulator.
        kernel = partial(_linear_kernel_noacc, compute_dtype=compute_dtype)
        grid = (M // tm, Dout // tn)
        in_specs = [
            pl.BlockSpec((tm, Din), lambda i, j: (i, 0)),
            pl.BlockSpec((Din, tn), lambda i, j: (0, j)),
            pl.BlockSpec((1, tn), lambda i, j: (0, j)),
        ]
        out_specs = pl.BlockSpec((tm, tn), lambda i, j: (i, j))
        scratch = []
        dims = ("parallel", "parallel")
    else:
        tk = _fit(Din, 512, align=128)
        kernel = partial(_linear_kernel_acc, compute_dtype=compute_dtype)
        grid = (M // tm, Dout // tn, Din // tk)
        in_specs = [
            pl.BlockSpec((tm, tk), lambda i, j, k: (i, k)),
            pl.BlockSpec((tk, tn), lambda i, j, k: (k, j)),
            pl.BlockSpec((1, tn), lambda i, j, k: (0, j)),
        ]
        out_specs = pl.BlockSpec((tm, tn), lambda i, j, k: (i, j))
        scratch = [pltpu.VMEM((tm, tn), jnp.float32)]
        dims = ("parallel", "parallel", "arbitrary")

    return pl.pallas_call(
        kernel,
        out_shape=jax.ShapeDtypeStruct((M, Dout), x.dtype),
        grid=grid,
        in_specs=in_specs,
        out_specs=out_specs,
        scratch_shapes=scratch,
        compiler_params=pltpu.CompilerParams(dimension_semantics=dims),
    )(x, w_t, b2)


# ----------------------------------------------------------------------------
# Kernel 2: flash-style attention over (B, h, S, dk) with online softmax.
# ----------------------------------------------------------------------------
def _flash_attention_kernel(*refs, scale, compute_dtype, has_mask):
    if has_mask:
        q_ref, k_ref, v_ref, mask_ref, o_ref, m_ref, l_ref, acc_ref = refs
    else:
        q_ref, k_ref, v_ref, o_ref, m_ref, l_ref, acc_ref = refs
        mask_ref = None

    kv_step = pl.program_id(3)

    @pl.when(kv_step == 0)
    def _init():
        m_ref[...] = jnp.full(m_ref.shape, -jnp.inf, jnp.float32)
        l_ref[...] = jnp.zeros(l_ref.shape, jnp.float32)
        acc_ref[...] = jnp.zeros(acc_ref.shape, jnp.float32)

    # Fold 1/sqrt(dk) into q once (tq*dk multiplies instead of tq*tkv).
    q = (q_ref[0, 0].astype(jnp.float32) * scale).astype(compute_dtype)  # (tq, dk)
    k = k_ref[0, 0].astype(compute_dtype)                                # (tkv, dk)

    # scores = q @ k^T, f32 accumulation, no in-kernel transpose of k.
    s = lax.dot_general(q, k, dimension_numbers=(((1,), (1,)), ((), ())),
                        preferred_element_type=jnp.float32)              # (tq, tkv)
    if mask_ref is not None:
        # exact masked_fill semantics (replace, not add), integer mask in VMEM
        s = jnp.where(mask_ref[0] == 0, jnp.float32(-1e9), s)

    m_prev = m_ref[...]                                                  # (tq, 1)
    m_new = jnp.maximum(m_prev, jnp.max(s, axis=-1, keepdims=True))
    alpha = jnp.exp(m_prev - m_new)                                      # (tq, 1)
    p = jnp.exp(s - m_new)                                               # (tq, tkv) f32

    l_ref[...] = alpha * l_ref[...] + jnp.sum(p, axis=-1, keepdims=True)
    v = v_ref[0, 0].astype(compute_dtype)                                # (tkv, dk)
    acc_ref[...] = alpha * acc_ref[...] + jnp.dot(
        p.astype(compute_dtype), v, preferred_element_type=jnp.float32)
    m_ref[...] = m_new

    @pl.when(kv_step == pl.num_programs(3) - 1)
    def _finalize():
        o_ref[0, 0] = (acc_ref[...] / l_ref[...]).astype(o_ref.dtype)


def flash_attention(q, k, v, mask, *, compute_dtype, tq_pref=128, tkv_pref=128):
    """q: (B, h, Sq, dk); k, v: (B, h, Skv, dk); mask: (B, Sq, Skv) int or None."""
    B, h, S_q, dk = q.shape
    S_kv = k.shape[2]
    scale = 1.0 / math.sqrt(dk)

    tq = _fit(S_q, tq_pref, align=8)
    tkv = _fit(S_kv, tkv_pref, align=128)
    grid = (B, h, S_q // tq, S_kv // tkv)

    in_specs = [
        pl.BlockSpec((1, 1, tq, dk), lambda b, hd, qi, ki: (b, hd, qi, 0)),
        pl.BlockSpec((1, 1, tkv, dk), lambda b, hd, qi, ki: (b, hd, ki, 0)),
        pl.BlockSpec((1, 1, tkv, dk), lambda b, hd, qi, ki: (b, hd, ki, 0)),
    ]
    operands = [q, k, v]
    if mask is not None:
        in_specs.append(
            pl.BlockSpec((1, tq, tkv), lambda b, hd, qi, ki: (b, qi, ki)))
        operands.append(mask)

    kernel = partial(_flash_attention_kernel, scale=scale,
                     compute_dtype=compute_dtype, has_mask=mask is not None)

    return pl.pallas_call(
        kernel,
        out_shape=jax.ShapeDtypeStruct((B, h, S_q, dk), q.dtype),
        grid=grid,
        in_specs=in_specs,
        out_specs=pl.BlockSpec((1, 1, tq, dk),
                               lambda b, hd, qi, ki: (b, hd, qi, 0)),
        scratch_shapes=[
            pltpu.VMEM((tq, 1), jnp.float32),    # running row max  m
            pltpu.VMEM((tq, 1), jnp.float32),    # running denom    l
            pltpu.VMEM((tq, dk), jnp.float32),   # running numerator acc
        ],
        compiler_params=pltpu.CompilerParams(
            dimension_semantics=("parallel", "parallel", "parallel", "arbitrary")),
    )(*operands)


# ----------------------------------------------------------------------------
# MultiHeadAttention forward (mirrors the PyTorch module semantics)
# ----------------------------------------------------------------------------
def multi_head_attention(params, query, key, value, mask=None,
                         compute_dtype=jnp.bfloat16):
    """query: (B, Sq, d_model); key/value: (B, Skv, d_model);
    mask: broadcastable to (B, 1, Sq, Skv) with 0 = masked, or None."""
    B, S_q, d_model = query.shape
    S_kv = key.shape[1]
    h = params["h"]
    dk = d_model // h

    # One-time weight transposes (static params) -> plain (tm,tk)@(tk,tn) dots.
    wq_t, wk_t, wv_t = params["q_w"].T, params["k_w"].T, params["v_w"].T

    if (query is key) and (key is value):
        # Self-attention: single fused (d_model -> 3*d_model) projection.
        w_qkv = jnp.concatenate([wq_t, wk_t, wv_t], axis=1)          # (D, 3D)
        b_qkv = jnp.concatenate([params["q_b"], params["k_b"], params["v_b"]])
        qkv = linear(query.reshape(B * S_q, d_model), w_qkv, b_qkv,
                     compute_dtype=compute_dtype)                    # (B*S, 3D)
        q_p = qkv[:, :d_model]
        k_p = qkv[:, d_model:2 * d_model]
        v_p = qkv[:, 2 * d_model:]
    else:
        q_p = linear(query.reshape(B * S_q, d_model), wq_t, params["q_b"],
                     compute_dtype=compute_dtype)
        k_p = linear(key.reshape(B * S_kv, d_model), wk_t, params["k_b"],
                     compute_dtype=compute_dtype)
        v_p = linear(value.reshape(B * S_kv, d_model), wv_t, params["v_b"],
                     compute_dtype=compute_dtype)

    def split_heads(x, S):
        return x.reshape(B, S, h, dk).transpose(0, 2, 1, 3)          # (B, h, S, dk)

    q4 = split_heads(q_p, S_q)
    k4 = split_heads(k_p, S_kv)
    v4 = split_heads(v_p, S_kv)

    mask3 = None
    if mask is not None:
        mask3 = jnp.broadcast_to(mask, (B, 1, S_q, S_kv)) \
                   .reshape(B, S_q, S_kv).astype(jnp.int32)

    o4 = flash_attention(q4, k4, v4, mask3, compute_dtype=compute_dtype)

    # merge heads; dropout(p=0) is the identity; output projection
    o = o4.transpose(0, 2, 1, 3).reshape(B * S_q, d_model)
    out = linear(o, params["out_w"].T, params["out_b"],
                 compute_dtype=compute_dtype)
    return out.reshape(B, S_q, d_model)


# ----------------------------------------------------------------------------
# pure-JAX reference (f32, highest precision) for the sanity check
# ----------------------------------------------------------------------------
def _reference(params, query, key, value, mask):
    B = query.shape[0]
    d_model = query.shape[-1]
    h = params["h"]
    dk = d_model // h
    hp = lax.Precision.HIGHEST

    def lin(x, w, b):
        return jnp.einsum("bsi,oi->bso", x, w, precision=hp) + b

    def split(x):
        return jnp.transpose(x.reshape(B, -1, h, dk), (0, 2, 1, 3))

    q = split(lin(query, params["q_w"], params["q_b"]))
    k = split(lin(key, params["k_w"], params["k_b"]))
    v = split(lin(value, params["v_w"], params["v_b"]))
    s = jnp.einsum("bhqd,bhkd->bhqk", q, k, precision=hp) / math.sqrt(dk)
    if mask is not None:
        s = jnp.where(mask == 0, -1e9, s)
    p = jax.nn.softmax(s, axis=-1)
    o = jnp.einsum("bhqk,bhkd->bhqd", p, v, precision=hp)
    o = jnp.transpose(o, (0, 2, 1, 3)).reshape(B, -1, d_model)
    return lin(o, params["out_w"], params["out_b"])


if __name__ == "__main__":
    # small shapes consistent with the module: batch=2, seq=8, d_model=32, h=4
    B, S, d_model, h = 2, 8, 32, 4

    key0 = jax.random.PRNGKey(0)
    ks = jax.random.split(key0, 12)
    init = lambda k, shape: (jax.random.normal(k, shape, jnp.float32)
                             * (1.0 / math.sqrt(shape[-1])))

    params = {
        "h": h,
        "q_w": init(ks[0], (d_model, d_model)), "q_b": init(ks[1], (d_model,)),
        "k_w": init(ks[2], (d_model, d_model)), "k_b": init(ks[3], (d_model,)),
        "v_w": init(ks[4], (d_model, d_model)), "v_b": init(ks[5], (d_model,)),
        "out_w": init(ks[6], (d_model, d_model)), "out_b": init(ks[7], (d_model,)),
    }

    query = jax.random.normal(ks[8], (B, S, d_model), jnp.float32)
    key_in = jax.random.normal(ks[9], (B, S, d_model), jnp.float32)
    value = jax.random.normal(ks[10], (B, S, d_model), jnp.float32)
    # causal mask, (B, 1, S, S): 1 = keep, 0 = masked (masked_fill with -1e9)
    mask = jnp.broadcast_to(
        jnp.tril(jnp.ones((S, S), jnp.int32))[None, None], (B, 1, S, S))

    ref = _reference(params, query, key_in, value, mask)

    # 1) exact-f32 compute path: tight structural check vs f32 reference
    #    (tolerance covers MXU f32-matmul precision differences).
    out_f32 = jax.block_until_ready(
        multi_head_attention(params, query, key_in, value, mask,
                             compute_dtype=jnp.float32))
    assert out_f32.shape == (B, S, d_model)
    assert jnp.allclose(out_f32, ref, atol=2e-2, rtol=2e-2), "f32 path mismatch"

    # 2) default bf16-operand compute path (the performance configuration);
    #    tolerance accommodates bf16 quantization of a 3-matmul chain.
    out_bf16 = jax.block_until_ready(
        multi_head_attention(params, query, key_in, value, mask))
    assert jnp.allclose(out_bf16, ref, atol=8e-2, rtol=8e-2), "bf16 path mismatch"

    # 3) mask=None fast path (no mask DMA at all)
    out_nm = jax.block_until_ready(
        multi_head_attention(params, query, key_in, value, None))
    ref_nm = _reference(params, query, key_in, value, None)
    assert jnp.allclose(out_nm, ref_nm, atol=8e-2, rtol=8e-2), "no-mask mismatch"

    # 4) self-attention path (fused single-launch q/k/v projection)
    out_sa = jax.block_until_ready(
        multi_head_attention(params, query, query, query, mask))
    ref_sa = _reference(params, query, query, query, mask)
    assert jnp.allclose(out_sa, ref_sa, atol=8e-2, rtol=8e-2), "self-attn mismatch"

    print("KERNEL_OK")
</pallas_src>

<mosaic_0001>
module attributes {stable_mosaic.version = 11 : i64} {
  func.func @_linear_kernel_noacc(%arg0: i32, %arg1: i32, %arg2: memref<16x32xf32, #tpu.memory_space<vmem>>, %arg3: memref<32x32xf32, #tpu.memory_space<vmem>>, %arg4: memref<1x32xf32, #tpu.memory_space<vmem>>, %arg5: memref<16x32xf32, #tpu.memory_space<vmem>>) attributes {dimension_semantics = [#tpu.dimension_semantics<parallel>, #tpu.dimension_semantics<parallel>], iteration_bounds = array<i64: 1, 1>, scalar_prefetch = 0 : i64, scratch_operands = 0 : i64, tpu.core_type = #tpu.core_type<tc>, window_params = [{transform_indices = @transform_0, window_bounds = array<i64: 16, 32>}, {transform_indices = @transform_1, window_bounds = array<i64: 32, 32>}, {transform_indices = @transform_2, window_bounds = array<i64: 1, 32>}, {transform_indices = @transform_3, window_bounds = array<i64: 16, 32>}]} {
    %c0 = arith.constant 0 : index
    %c0_0 = arith.constant 0 : index
    %0 = vector.load %arg2[%c0, %c0_0] : memref<16x32xf32, #tpu.memory_space<vmem>>, vector<16x32xf32>
    %c0_1 = arith.constant 0 : index
    %c0_2 = arith.constant 0 : index
    %1 = vector.load %arg3[%c0_1, %c0_2] : memref<32x32xf32, #tpu.memory_space<vmem>>, vector<32x32xf32>
    %cst = arith.constant dense<0.000000e+00> : vector<16x32xf32>
    %2 = tpu.matmul %0, %1, %cst {dimension_numbers = #tpu.dot_dimension_numbers<[1], [0], [0], [1], [0, 0, 1, 1], [], []>} : vector<16x32xf32>, vector<32x32xf32>, vector<16x32xf32> -> vector<16x32xf32>
    %c0_3 = arith.constant 0 : index
    %c0_4 = arith.constant 0 : index
    %3 = vector.load %arg4[%c0_3, %c0_4] : memref<1x32xf32, #tpu.memory_space<vmem>>, vector<1x32xf32>
    %4 = vector.broadcast %3 : vector<1x32xf32> to vector<16x32xf32>
    %5 = arith.addf %2, %4 : vector<16x32xf32>
    %c0_5 = arith.constant 0 : index
    %c0_6 = arith.constant 0 : index
    %6 = vector.load %arg5[%c0_5, %c0_6] : memref<16x32xf32, #tpu.memory_space<vmem>>, vector<16x32xf32>
    tpu.vector_store %arg5[%c0_5, %c0_6], %5 {strides = array<i32>} : memref<16x32xf32, #tpu.memory_space<vmem>>, vector<16x32xf32>,
    return
  }
  func.func @transform_0(%arg0: i32, %arg1: i32) -> (i32, i32) {
    %c0_i32 = arith.constant 0 : i32
    %c0_i32_0 = arith.constant 0 : i32
    return %arg0, %c0_i32 : i32, i32
  }
  func.func @transform_1(%arg0: i32, %arg1: i32) -> (i32, i32) {
    %c0_i32 = arith.constant 0 : i32
    %c0_i32_0 = arith.constant 0 : i32
    return %c0_i32, %arg1 : i32, i32
  }
  func.func @transform_2(%arg0: i32, %arg1: i32) -> (i32, i32) {
    %c0_i32 = arith.constant 0 : i32
    %c0_i32_0 = arith.constant 0 : i32
    return %c0_i32, %arg1 : i32, i32
  }
  func.func @transform_3(%arg0: i32, %arg1: i32) -> (i32, i32) {
    %c0_i32 = arith.constant 0 : i32
    return %arg0, %arg1 : i32, i32
  }
}

</mosaic_0001>

<bundles_post_ra>
// kernel: tpu_custom_call.1
= control target key start
LH: loop header
LB: loop body
LE: loop exit
PB: predicated region body
PF: predicated region fallthrough
CT: control target
= control target key end

     0   :  { %8 = vsyncpa [#allocation3], 0  ;;  %s299_s0 = inlined_call_operand.hbm [shape: f32[16,32], index: 0, kind: input, shape index: {}]   ;;  %s300_s1 = inlined_call_operand.hbm [shape: f32[32,32], index: 1, kind: input, shape index: {}]   ;;  %s301_s2 = inlined_call_operand.vmem [shape: f32[1,32], index: 2, kind: input, shape index: {}]   ;;  %s302_s3 = inlined_call_operand.hbm [shape: f32[16,32], index: 3, kind: output, shape index: {}]  }
   0x1   :  { %9 = vsyncpa [#allocation6], 0 }
   0x2   :  { %10 = vsyncpa [#allocation4], 0  ;;  %s249_s12 = smov [#allocation2]  }
   0x3   :  { %s16_s13 = sshll.u32 %s249_s12, 4  ;;  %s17_s13 = int_to_ptr.vmem [resolvable:$true] %s16_s13 }
   0x4   :  { %s191_s14 = scalar_lea.vmem %s17_s13, 256  ;;  %p196_p1 = scmp.lt.s32.totalorder %s17_s13, %s17_s13 }
   0x5   :  { %p192_p0 = scmp.ne.s32.totalorder %s17_s13, %s191_s14  ;;  %p197_p2 = scmp.lt.s32.totalorder %s191_s14, %s191_s14 }
   0x7   :  { %p198_p3 = por %p197_p2, %p196_p1 }
   0x9   :  { %p199_p4 = pnand %p198_p3, %p192_p0 }
   0xb   :  { %202 = shalt.err (!%p199_p4)
}
   0xc   :  { %s250_s15 = smov 128   ;;  %s251_s16 = smov 8  }
   0xd   :  { %22 = dma.hbm_to_vmem [thread:$0]  %s299_s0, 256, %s17_s13, [#allocation3], %s250_s15, %s250_s15, %s251_s16  }
   0xe   :  { %s252_s19 = smov [#allocation5]  }
   0xf   :  { %s28_s20 = sshll.u32 %s252_s19, 4  ;;  %s29_s20 = int_to_ptr.vmem [resolvable:$true] %s28_s20 }
  0x10   :  { %s211_s21 = scalar_lea.vmem %s29_s20, 512  ;;  %p216_p6 = scmp.lt.s32.totalorder %s29_s20, %s29_s20 }
  0x11   :  { %p212_p5 = scmp.ne.s32.totalorder %s29_s20, %s211_s21  ;;  %p217_p7 = scmp.lt.s32.totalorder %s211_s21, %s211_s21 }
  0x13   :  { %p218_p8 = por %p217_p7, %p216_p6 }
  0x15   :  { %p219_p9 = pnand %p218_p8, %p212_p5 }
  0x17   :  { %222 = shalt.err (!%p219_p9)
}
  0x18   :  { %34 = dma.hbm_to_vmem [thread:$0]  %s300_s1, 512, %s29_s20, [#allocation6], %s250_s15, %s250_s15, %s251_s16  }
  0x19   :  { %243 = dma.done.wait [#allocation3], 256  }
  0x1a   :  { %244 = vsyncadd [#allocation3], 4294967040 }
  0x1b   :  { %245 = dma.done.wait [#allocation6], 512  }
  0x1c   :  { %246 = vsyncadd [#allocation6], 4294966784  ;;  %vm56_vm0 = vcmask 261120   ;;  %v48_v0 = vld [vmem:[#allocation5 + $0x18] sm:$0xff]  ;;  %v47_v1 = vld [vmem:[#allocation5 + $0x10] sm:$0xff]  ;;  %s253_s24 = smov [#allocation7]  }
  0x1d   :  { %167 = vmatprep.subr.mxu0 %v48_v0  ;;  %v43_v2 = vld [vmem:[#allocation2] sm:$0xff]  ;;  %v46_v3 = vld [vmem:[#allocation5 + $0x8] sm:$0xff]  ;;  %v45_v4 = vld [vmem:[#allocation5] sm:$0xff]  ;;  %s145_s25 = sshll.u32 %s253_s24, 4  ;;  %s146_s25 = int_to_ptr.vmem [resolvable:$true] %s145_s25 }
  0x1e   :  { %168 = vmatpush3.msra.mxu0 %v48_v0  ;;  %175 = vmatprep.mubr.msk.f32.mxu0 %vm56_vm0, %v43_v2  ;;  %v44_v5 = vld [vmem:[#allocation2 + $0x8] sm:$0xff]  ;;  %v158_v6 = vld [vmem:[%s301_s2] ss:$0 sm:$0xff]  ;;  %s223_s26 = scalar_lea.vmem %s146_s25, 256  ;;  %p228_p11 = scmp.lt.s32.totalorder %s146_s25, %s146_s25 }
  0x1f   :  { %169 = vmatprep.subr.mxu0 %v47_v1  ;;  %p224_p10 = scmp.ne.s32.totalorder %s146_s25, %s223_s26  ;;  %p229_p12 = scmp.lt.s32.totalorder %s223_s26, %s223_s26 }
  0x20   :  { %170 = vmatpush3.msra.mxu0 %v47_v1 }
  0x21   :  { %171 = vmatprep.subr.mxu0 %v46_v3  ;;  %p230_p13 = por %p229_p12, %p228_p11 }
  0x22   :  { %172 = vmatpush3.msra.mxu0 %v46_v3 }
  0x23   :  { %173 = vmatprep.subr.mxu0 %v45_v4  ;;  %p231_p0 = pnand %p230_p13, %p224_p10 }
  0x24   :  { %174 = vmatpush3.msra.mxu0 %v45_v4 }
  0x25   :  { %176 = vmatmul.mubr.msk.f32.vlgmr.msra.gmra.mxu0 %vm56_vm0, %v44_v5 }
  0xe5   :  { %v177_v7 = vpop.f32.mrf.mxu0 }
  0xe6   :  { %v135_v8 = vadd.f32 %v177_v7, %v158_v6 }
  0xe7   :  { %v129_v9 = vpop.f32.mrf.mxu0 }
  0xe8   :  { %139 = vst.msk [vmem:[#allocation7 + $0x8] sm:$0xff] %vm56_vm0, %v135_v8  ;;  %v130_v10 = vadd.f32 %v158_v6, %v129_v9 }
  0xea   :  { %138 = vst.msk [vmem:[#allocation7] sm:$0xff] %vm56_vm0, %v130_v10 }
  0xeb   :  { %234 = shalt.err (!%p231_p0)
}
  0xec   :  { %151 = dma.vmem_to_hbm [thread:$0]  %s146_s25, 256, %s302_s3, [#allocation4], %s250_s15, %s250_s15, %s251_s16  }
  0xed   :  { %247 = dma.done.wait [#allocation4], 256  }
  0xee   :  { %248 = vsyncadd [#allocation4], 4294967040 }
  0xef   :  { %155 = vsyncpa [#allocation3], 1 }
  0xf0   :  { %156 = vsyncpa [#allocation6], 1 }
  0xf1   :  { %157 = vsyncpa [#allocation4], 1 }

</bundles_post_ra>
